<compile_context>
chip_gen: v6e
topology: v6e:2x2x1
jax: 0.10.0
libtpu: 0.0.40
codegen_flags: <defaults>
</compile_context>

<pallas_src>
import functools

import jax
import jax.numpy as jnp
import numpy as np
from jax.experimental import pallas as pl
from jax.experimental.pallas import tpu as pltpu


def _resize_copy_kernel(idx_ref, x_ref, o_ref):
    """Pure tile copy; the gather is done by the input index_map via idx_ref."""
    del idx_ref  # only consumed by the BlockSpec index_maps
    o_ref[...] = x_ref[...]


def _pick_col_tile(D: int) -> int:
    """Largest lane-aligned column tile dividing D (full-extent D as fallback)."""
    if D % 128 != 0 or D <= 1024:
        return D
    for t in (1024, 512, 256, 128):
        if D % t == 0:
            return t
    return D


@functools.partial(jax.jit, static_argnames=("length",))
def resize(x: jax.Array, length: int) -> jax.Array:
    """Pallas equivalent of Resize(length)(x) for a 2-D input x of shape (N, D)."""
    N, D = x.shape
    # Exactly replicate Python's `int(i * N / length)` (truncated float division,
    # same semantics as the PyTorch module, including any float rounding).
    idx = jnp.asarray(
        np.array([int(i * N / length) for i in range(length)], dtype=np.int32))

    tD = _pick_col_tile(D)
    n_col_tiles = D // tD
    itemsize = jnp.dtype(x.dtype).itemsize

    grid_spec = pltpu.PrefetchScalarGridSpec(
        num_scalar_prefetch=1,          # gather indices land in SMEM for index_maps
        grid=(n_col_tiles, length),     # parallel col-tile axis first, rows last
        in_specs=[
            # DMA-side row gather: fetch only row idx[i], column tile j.
            pl.BlockSpec((1, 1, tD), lambda j, i, idx_ref: (idx_ref[i], 0, j)),
        ],
        # Lane-dense output: row i, column tile j of the (length, 1, D) buffer.
        out_specs=pl.BlockSpec((1, 1, tD), lambda j, i, idx_ref: (i, 0, j)),
    )

    gathered = pl.pallas_call(
        _resize_copy_kernel,
        grid_spec=grid_spec,
        out_shape=jax.ShapeDtypeStruct((length, 1, D), x.dtype),
        compiler_params=pltpu.CompilerParams(
            # Column-tile axis is independent -> megacore-parallel on v7x;
            # row (gather) axis is arbitrary.
            dimension_semantics=("parallel", "arbitrary"),
        ),
        cost_estimate=pl.CostEstimate(
            flops=0,
            transcendentals=0,
            # read only the gathered rows + write the output
            bytes_accessed=2 * length * D * itemsize,
        ),
    )(idx, x.reshape(N, 1, D))

    # Final (D, length) layout: transpose hoisted out of the kernel (fuses into
    # the consumer instead of forcing masked sub-128-lane stores in-kernel).
    return gathered.reshape(length, D).T


if __name__ == "__main__":
    key = jax.random.PRNGKey(0)
    N, D = 50, 128           # N not divisible by length to exercise the idx table
    length = 16
    x = jax.random.normal(key, (N, D), dtype=jnp.float32)

    out = resize(x, length)
    out = jax.block_until_ready(out)

    # Reference (pure numpy, mirrors the PyTorch forward exactly).
    x_np = np.asarray(x)
    ref = np.array([x_np[int(i * N / length)] for i in range(length)]).transpose([1, 0])
    assert out.shape == (D, length), out.shape
    np.testing.assert_allclose(np.asarray(out), ref, rtol=0, atol=0)

    print("KERNEL_OK")
</pallas_src>

<mosaic_0001>
module attributes {stable_mosaic.version = 11 : i64} {
  func.func @_resize_copy_kernel(%arg0: i32, %arg1: i32, %arg2: memref<16xi32, #tpu.memory_space<smem>>, %arg3: memref<1x1x128xf32, #tpu.memory_space<vmem>>, %arg4: memref<1x1x128xf32, #tpu.memory_space<vmem>>) attributes {dimension_semantics = [#tpu.dimension_semantics<parallel>, #tpu.dimension_semantics<arbitrary>], iteration_bounds = array<i64: 1, 16>, scalar_prefetch = 1 : i64, scratch_operands = 0 : i64, tpu.core_type = #tpu.core_type<tc>, window_params = [{transform_indices = @transform_0, window_bounds = array<i64: 1, 1, 128>}, {transform_indices = @transform_1, window_bounds = array<i64: 1, 1, 128>}]} {
    %c0 = arith.constant 0 : index
    %c0_0 = arith.constant 0 : index
    %c0_1 = arith.constant 0 : index
    %0 = vector.load %arg3[%c0, %c0_0, %c0_1] : memref<1x1x128xf32, #tpu.memory_space<vmem>>, vector<1x1x128xf32>
    %c0_2 = arith.constant 0 : index
    %c0_3 = arith.constant 0 : index
    %c0_4 = arith.constant 0 : index
    %1 = vector.load %arg4[%c0_2, %c0_3, %c0_4] : memref<1x1x128xf32, #tpu.memory_space<vmem>>, vector<1x1x128xf32>
    tpu.vector_store %arg4[%c0_2, %c0_3, %c0_4], %0 {strides = array<i32>} : memref<1x1x128xf32, #tpu.memory_space<vmem>>, vector<1x1x128xf32>,
    return
  }
  func.func @transform_0(%arg0: i32, %arg1: i32, %arg2: memref<16xi32, #tpu.memory_space<smem>>) -> (i32, i32, i32) {
    %0 = arith.index_cast %arg1 : i32 to index
    %1 = memref.load %arg2[%0] : memref<16xi32, #tpu.memory_space<smem>>
    %c0_i32 = arith.constant 0 : i32
    %c0_i32_0 = arith.constant 0 : i32
    return %1, %c0_i32, %arg0 : i32, i32, i32
  }
  func.func @transform_1(%arg0: i32, %arg1: i32, %arg2: memref<16xi32, #tpu.memory_space<smem>>) -> (i32, i32, i32) {
    %c0_i32 = arith.constant 0 : i32
    %c0_i32_0 = arith.constant 0 : i32
    return %arg1, %c0_i32, %arg0 : i32, i32, i32
  }
}

</mosaic_0001>

<bundles_post_ra>
// kernel: resize.1
= control target key start
LH: loop header
LB: loop body
LE: loop exit
PB: predicated region body
PF: predicated region fallthrough
CT: control target
= control target key end

     0   :  { %s507_s0 = inlined_call_operand.vmem [shape: s32[16], index: 0, kind: input, shape index: {}]   ;;  %s508_s1 = inlined_call_operand.vmem [shape: f32[50,1,128], index: 1, kind: input, shape index: {}]   ;;  %s509_s2 = inlined_call_operand.hbm [shape: f32[16,1,128], index: 2, kind: output, shape index: {}]  }
   0x1   :  { %s7_s11 = sshll.u32 %s507_s0, 4  ;;  %s8_s11 = int_to_ptr.vmem [resolvable:$true] %s7_s11 }
   0x2   :  { %s291_s12 = scalar_lea.vmem %s8_s11, 16  ;;  %p296_p1 = scmp.lt.s32.totalorder %s8_s11, %s8_s11 }
   0x3   :  { %p292_p0 = scmp.ne.s32.totalorder %s8_s11, %s291_s12  ;;  %p297_p2 = scmp.lt.s32.totalorder %s291_s12, %s291_s12 }
   0x5   :  { %p298_p3 = por %p297_p2, %p296_p1 }
   0x7   :  { %p299_p4 = pnand %p298_p3, %p292_p0 }
   0x9   :  { %302 = shalt.err (!%p299_p4)  }
   0xa   :  { %s383_s13 = smov [#allocation3]  }
   0xb   :  { %10 = dma.vmem_to_smem %s8_s11, 16, %s383_s13, [#allocation2] }
   0xc   :  { %353 = dma.done.wait [#allocation2], 16 }
   0xd   :  { %354 = vsyncadd [#allocation2], 4294967280 }
   0xe   :  { %12 = sfence }
   0xf   :  { %13 = vsyncpa [#allocation5], 0 }
  0x10   :  { %15 = vsyncpa [#allocation5 + $0x1], 0  ;;  %s403_s14 = smov 0   ;;  %s405_s15 = smov 0  }
  0x11   :  { %s407_s0 = smov 0   ;;  %s409_s16 = smov 0  }
  0x12   :  { %s411_s17 = smov 0   ;;  %s413_s18 = smov 0  }
  0x13 LB: > { %s227_s19 = sadd.s32 4294967295, %s381_s18   ;;  %s228_s20 = sadd.s32 4294967294, %s381_s18   ;;  %s381_s18 = sphi %s413_s18, %s21_s18   ;;  %s377_s17 = sphi %s411_s17, %s516_s17   ;;  %s373_s16 = sphi %s409_s16, %s515_s16   ;;  %s369_s0 = sphi %s407_s0, %s514_s0   ;;  %s365_s15 = sphi %s405_s15, %s513_s15   ;;  %s361_s14 = sphi %s403_s14, %s512_s14  }
  0x14   : > { %s30_s21 = sadd.s32 1, %s377_s17  ;;  %s72_s22 = sadd.s32 1, %s369_s0 }
  0x15   : > { %p31_p5 = scmp.ge.s32.totalorder %s30_s21, 16  ;;  %p82_p6 = scmp.ne.s32.totalorder %s369_s0, %s365_s15 }
  0x16   : > { %p83_p7 = scmp.eq.s32.totalorder %s227_s19, 15  ;;  %p88_p8 = scmp.ne.s32.totalorder %s365_s15, %s361_s14 }
  0x17   : > { %s518_s21 = smov (%p31_p5, %s30_s21), 0  ;;  %p89_p10 = scmp.eq.s32.totalorder %s228_s20, 15 }
  0x18   : > { %p443_p9 = por %p83_p7, %p82_p6  ;;  %s67_s24 = ssub.s32 %s377_s17, %s518_s21 }
  0x19   : > { %p231_p11 = scmp.ge.s32.totalorder %s381_s18, 1  ;;  %p70_p12 = scmp.eq.s32.totalorder %s67_s24, 0 }
  0x1a   : > { %p450_p13 = por %p89_p10, %p88_p8  ;;  %p118_p0 = scmp.lt.s32.totalorder %s381_s18, 17 }
  0x1b   : > { %s456_s26 = scalar_select %p70_p12, %s369_s0, %s72_s22  }
  0x1c   : > { %p119_p1 = pnand %p231_p11, %p118_p0 }
  0x1d   : > { %s137_s27 = sand.u32 (!%p119_p1), 1, %s365_s15   ;;  %s139_s28 = sld [smem:[#allocation3 + %s373_s16]] (!%p119_p1) }
  0x1e   : > { %122 = sbr.rel (%p119_p1) target bundleno = 55 (0x37), region = 24  ;;  %s138_s29 = scalar_lea.vmem (!%p119_p1), [#allocation4], %s137_s27 }
  0x1f   : > { %s163_s30 = sshll.u32 (!%p119_p1), %s138_s29, 4  ;;  %s232_s3 = sshll.u32 (!%p119_p1), %s373_s16, 4  ;;  %s461_s30 = int_to_ptr.vmem [resolvable:$true] %s163_s30 }
  0x20   : > { %s161_s9 = scalar_lea.hbm (!%p119_p1), %s509_s2, %s232_s3  ;;  %s150_s10 = scalar_lea.sflag (!%p119_p1), [#allocation5], %s137_s27 }
  0x21   : > { %s303_s11 = scalar_lea.vmem (!%p119_p1), %s461_s30, 16  ;;  %s384_s12 = smov (!%p119_p1), [#allocation4]  }
  0x22   : > { %p304_p3 = scmp.ne.s32.totalorder (!%p119_p1), %s461_s30, %s303_s11  ;;  %s307_s13 = sshll.u32 (!%p119_p1), %s384_s12, 4  ;;  %s308_s13 = int_to_ptr.vmem [resolvable:$false] %s307_s13 }
  0x23   : > { %p140_p2 = scmp.lt.s32.totalorder %s139_s28, 49  ;;  %s309_s16 = scalar_lea.vmem %s308_s13, 32 }
  0x24   : > { %p305_p4 = pnand %p304_p3, %p443_p9  ;;  %p310_p6 = scmp.lt.s32.totalorder %s461_s30, %s308_s13 }
  0x25   : > { %s520_s28 = smov (!%p140_p2, %s139_s28), 49  ;;  %p311_p7 = scmp.lt.s32.totalorder %s309_s16, %s303_s11 }
  0x26   : > { %s145_s6 = scalar_lea.vmem %s508_s1, %s520_s28  ;;  %p306_p5 = pneg %p305_p4 }
  0x27   : > { %v147_v0 = vld [vmem:[%s145_s6] sm:$0x1]  ;;  %p312_p8 = por %p311_p7, %p310_p6 }
  0x28   : > { %148 = vst [vmem:[%s138_s29] sm:$0x1] %v147_v0 }
  0x29   : > { %p313_p10 = pnand %p312_p8, %p306_p5 }
  0x2b   : > { %316 = shalt.err (!%p313_p10)
}
  0x2c   : > { %s317_s19 = scalar_lea.hbm %s161_s9, 16  ;;  %s321_s24 = scalar_lea.hbm %s509_s2, 256 }
  0x2d   : > { %p318_p11 = scmp.ne.s32.totalorder %s161_s9, %s317_s19  ;;  %p322_p1 = scmp.lt.s32.totalorder %s161_s9, %s509_s2 }
  0x2e   : > { %p323_p2 = scmp.lt.s32.totalorder %s321_s24, %s317_s19 }
  0x2f   : > { %p319_p12 = pnand %p318_p11, %p443_p9 }
  0x30   : > { %p324_p3 = por %p323_p2, %p322_p1 }
  0x31   : > { %p320_p0 = pneg %p319_p12 }
  0x33   : > { %p325_p4 = pnand %p324_p3, %p320_p0 }
  0x35   : > { %328 = shalt.err (!%p325_p4)
}
  0x36   : > { %235 = dma.vmem_to_hbm [thread:$0]  (%p443_p9), %s461_s30, 16, %s161_s9, %s150_s10  }
  0x37 PF: > { %p241_p5 = scmp.ge.s32.totalorder %s381_s18, 2  ;;  %s175_s29 = sand.u32 1, %s361_s14  }
  0x38   : > { %s176_s3 = scalar_lea.sflag [#allocation5], %s175_s29 }
  0x39   : > { %p238_p6 = pnand %p241_p5, %p450_p13 }
  0x3b   : > { %p239_p7 = pneg %p238_p6 }
  0x3d   : > { %356 = dma.done.wait (%p239_p7), %s176_s3, 16  }
  0x3e   : > { %358 = vsyncadd (%p239_p7), %s176_s3, 4294967280  ;;  %s21_s18 = sadd.s32 1, %s381_s18   ;;  %s512_s14 = smov %s365_s15 }
  0x3f   : > { %p18_p8 = scmp.ge.s32.totalorder %s21_s18, 18   ;;  %s513_s15 = smov %s369_s0 }
  0x40   : > { %s514_s0 = smov %s456_s26  ;;  %s515_s16 = smov %s377_s17 }
  0x41   : > { %s516_s17 = smov %s518_s21  ;;  %20 = sbr.rel (!%p18_p8) target bundleno = 19 (0x13), region = 59 }
  0x46   :  { %180 = vsyncpa [#allocation5], 1 }
  0x47   :  { %182 = vsyncpa [#allocation5 + $0x1], 1 }

</bundles_post_ra>
